<compile_context>
chip_gen: v5e
topology: v5e:2x2
jax: 0.10.0
libtpu: 0.0.40
codegen_flags: <defaults>
</compile_context>

<pallas_src>
import functools

import jax
import jax.numpy as jnp
from jax import lax
from jax.experimental import pallas as pl
from jax.experimental.pallas import tpu as pltpu


def _round_up(x, m):
    return (x + m - 1) // m * m


def _cnn_encoder_kernel(x_ref, w_ref, b_ref, o_ref, *, seq_len, unroll):
    """One batch tile of: Conv1d(k=3, pad=1) -> ReLU -> MaxPool(L).

    x_ref: (L+2, BT, D)  bf16 embedded tokens, zero rows at 0 and L+1
                         (the conv's zero padding), position-major.
    w_ref: (3, D, Hp)    bf16 conv tap weights (tap k multiplies x[l+k-1]).
    b_ref: (1, Hp)       f32  conv bias, lane-padded.
    o_ref: (BT, Hp)      f32  pooled sentence encodings.
    """
    # Tap weights loaded once; loop-invariant RHS stays resident across L.
    # TODO(synk): for long-L / small-tile configs, stage them explicitly with
    # pltpu.matmul_push_rhs / matmul_acc_lhs / matmul_pop.
    w0 = w_ref[0]
    w1 = w_ref[1]
    w2 = w_ref[2]

    def tap_dot(l):
        # Pre-bias conv output for sequence position l: taps l-1, l, l+1 of the
        # original sequence are rows l, l+1, l+2 of the zero-padded block.
        return (jnp.dot(x_ref[l], w0, preferred_element_type=jnp.float32)
                + jnp.dot(x_ref[l + 1], w1, preferred_element_type=jnp.float32)
                + jnp.dot(x_ref[l + 2], w2, preferred_element_type=jnp.float32))

    def chunk_max(base):
        # Pairwise/tree max over `unroll` consecutive positions so the running
        # max accumulator is read/written once per chunk, not once per position.
        ds = [tap_dot(base + u) for u in range(unroll)]
        while len(ds) > 1:
            nxt = [jnp.maximum(ds[i], ds[i + 1]) for i in range(0, len(ds) - 1, 2)]
            if len(ds) % 2:
                nxt.append(ds[-1])
            ds = nxt
        return ds[0]

    n_main = (seq_len // unroll) * unroll
    m = chunk_max(0)
    if n_main > unroll:
        m = lax.fori_loop(
            1, n_main // unroll,
            lambda i, acc: jnp.maximum(acc, chunk_max(i * unroll)),
            m)
    for l in range(n_main, seq_len):          # static remainder (< unroll)
        m = jnp.maximum(m, tap_dot(l))

    # Bias + ReLU commute with the max (monotone / per-channel constant), so
    # they are applied exactly once on the pooled (BT, Hp) result.
    o_ref[...] = jnp.maximum(m + b_ref[...], 0.0)


def _choose_batch_tile(batch, padded_len, *, bt_cap=1024, vmem_per_buf=8 << 20):
    """Rows per grid step, decoupled from L.

    Sized by an explicit per-input-buffer VMEM budget (the block is (L+2)
    positions x bt rows x one 128-lane bf16 tile after lane padding), capped at
    `bt_cap` so small-L configs still amortise per-step overhead with long MXU
    runs, and kept to >= 2 grid steps whenever there is enough batch for two
    >=128-row tiles (so v7x's two TensorCores both get work).
    """
    b8 = _round_up(max(batch, 1), 8)
    row_bytes = padded_len * 128 * 2              # lane-padded bf16 bytes / row
    budget_bt = max(8, (vmem_per_buf // row_bytes) // 8 * 8)
    bt = min(bt_cap, budget_bt, b8)
    if b8 >= 256:                                 # enough work for both TCs
        bt = min(bt, _round_up(-(-b8 // 2), 8))
    # TODO(synk): for very long max_length where the budget forces tiny bt,
    # split L onto an "arbitrary" grid axis with a VMEM running-max scratch.
    return max(8, (bt // 8) * 8)


def embed_tokens(word, pos1, pos2, word_emb, pos1_emb, pos2_emb, batch_pad,
                 dtype=jnp.bfloat16):
    """Embedding gather + concat, position-major, bf16 end-to-end, with the
    conv's zero padding folded in along L.  The only HBM intermediate fed to
    the kernel is the (L+2, Bp, D) bf16 tensor — no 3x-wide im2col, no f32."""
    B, L = word.shape
    if batch_pad != B:
        pad = ((0, batch_pad - B), (0, 0))
        word = jnp.pad(word, pad)   # padded rows gather index 0; sliced off later
        pos1 = jnp.pad(pos1, pad)
        pos2 = jnp.pad(pos2, pad)
    we = jnp.take(word_emb.astype(dtype), word.T, axis=0)   # (L, Bp, word_dim)
    p1 = jnp.take(pos1_emb.astype(dtype), pos1.T, axis=0)   # (L, Bp, pos_dim)
    p2 = jnp.take(pos2_emb.astype(dtype), pos2.T, axis=0)   # (L, Bp, pos_dim)
    x = jnp.concatenate([we, p1, p2], axis=-1)               # (L, Bp, D)
    zero = jnp.zeros((1,) + x.shape[1:], x.dtype)
    return jnp.concatenate([zero, x, zero], axis=0)          # (L+2, Bp, D)


def cnn_sentence_encoder_pallas(x_pad, conv_w, conv_b, bt):
    """x_pad: (L+2, Bp, D) bf16 (zero rows at both ends, Bp % bt == 0);
    conv_w: (H, D, 3) torch Conv1d weight; conv_b: (H,).
    Returns (Bp, Hp) float32 with Hp = H rounded up to 128 lanes."""
    Lp, Bp, D = x_pad.shape
    L = Lp - 2
    H, Dw, K = conv_w.shape
    assert K == 3 and Dw == D and Bp % bt == 0
    Hp = _round_up(max(H, 128), 128)             # 230 -> 256: lane-dense output

    # (H, D, 3) -> (3, D, Hp); tap k multiplies x[l + k - 1].
    w = jnp.transpose(conv_w, (2, 1, 0))
    w = jnp.pad(w, ((0, 0), (0, 0), (0, Hp - H))).astype(x_pad.dtype)
    b = jnp.pad(conv_b, (0, Hp - H)).reshape(1, Hp).astype(jnp.float32)

    unroll = max(1, min(4, L))
    kernel = functools.partial(_cnn_encoder_kernel, seq_len=L, unroll=unroll)

    # Rough scoped-VMEM need: double-buffered input + output blocks, resident
    # weights/bias, plus slack for the unrolled f32 dot intermediates.
    in_block = Lp * bt * _round_up(D, 128) * 2
    out_block = bt * Hp * 4
    slack = (unroll + 2) * out_block + (4 << 20)
    vmem_limit = int(min(max(2 * in_block + 2 * out_block + slack, 32 << 20),
                         48 << 20))

    return pl.pallas_call(
        kernel,
        out_shape=jax.ShapeDtypeStruct((Bp, Hp), jnp.float32),
        grid=(Bp // bt,),
        in_specs=[
            pl.BlockSpec((Lp, bt, D), lambda i: (0, i, 0)),
            pl.BlockSpec((3, D, Hp), lambda i: (0, 0, 0)),   # resident weights
            pl.BlockSpec((1, Hp), lambda i: (0, 0)),         # resident bias
        ],
        out_specs=pl.BlockSpec((bt, Hp), lambda i: (i, 0)),
        compiler_params=pltpu.CompilerParams(
            dimension_semantics=("parallel",),
            vmem_limit_bytes=vmem_limit),
    )(x_pad, w, b)


def forward(word, pos1, pos2, params, *, bt_cap=1024, vmem_per_buf=8 << 20):
    B, L = word.shape
    H = params["conv_w"].shape[0]
    bt = _choose_batch_tile(B, L + 2, bt_cap=bt_cap, vmem_per_buf=vmem_per_buf)
    Bp = _round_up(B, bt)
    x_pad = embed_tokens(word, pos1, pos2, params["word_emb"],
                         params["pos1_emb"], params["pos2_emb"], Bp)
    out = cnn_sentence_encoder_pallas(x_pad, params["conv_w"],
                                      params["conv_b"], bt)
    return out[:B, :H]


def _reference(word, pos1, pos2, params):
    # Independent pure-JAX f32 reference of the same forward pass.
    we = jnp.take(params["word_emb"], word, axis=0)
    p1 = jnp.take(params["pos1_emb"], pos1, axis=0)
    p2 = jnp.take(params["pos2_emb"], pos2, axis=0)
    x = jnp.concatenate([we, p1, p2], axis=-1)            # (B, L, D)
    xp = jnp.pad(x, ((0, 0), (1, 1), (0, 0)))
    w = jnp.transpose(params["conv_w"], (2, 1, 0))        # (3, D, H)
    L = x.shape[1]
    y = sum(jnp.einsum("bld,dh->blh", xp[:, k:k + L, :], w[k]) for k in range(3))
    y = jnp.maximum(y + params["conv_b"][None, None, :], 0.0)
    return jnp.max(y, axis=1)


if __name__ == "__main__":
    # Small, module-consistent shapes.
    B = 2                    # batch
    max_length = 16          # sequence length
    word_dim = 50            # word_embedding_dim (module default)
    pos_dim = 5              # pos_embedding_dim (module default)
    hidden = 230             # hidden_size (module default)
    vocab = 24               # tiny synthetic vocab incl. [UNK]/[PAD]

    key = jax.random.PRNGKey(0)
    k1, k2, k3, k4, k5, k6, k7, k8 = jax.random.split(key, 8)

    # Deterministic synthetic parameters (shapes from the module __init__).
    word_emb = jax.random.normal(k1, (vocab, word_dim), jnp.float32) * 0.1
    word_emb = word_emb.at[vocab - 1].set(0.0)              # padding_idx row
    pos1_emb = jax.random.normal(k2, (2 * max_length, pos_dim), jnp.float32) * 0.1
    pos2_emb = jax.random.normal(k3, (2 * max_length, pos_dim), jnp.float32) * 0.1
    conv_w = jax.random.normal(k4, (hidden, word_dim + 2 * pos_dim, 3),
                               jnp.float32) * 0.05          # Conv1d weight (H, D, 3)
    conv_b = jax.random.normal(k5, (hidden,), jnp.float32) * 0.05

    params = dict(word_emb=word_emb, pos1_emb=pos1_emb, pos2_emb=pos2_emb,
                  conv_w=conv_w, conv_b=conv_b)

    # Deterministic synthetic inputs (what tokenize() would produce).
    word = jax.random.randint(k6, (B, max_length), 0, vocab, jnp.int32)
    pos1 = jax.random.randint(k7, (B, max_length), 0, 2 * max_length, jnp.int32)
    pos2 = jax.random.randint(k8, (B, max_length), 0, 2 * max_length, jnp.int32)

    fwd = jax.jit(forward)
    out = jax.block_until_ready(fwd(word, pos1, pos2, params))
    assert out.shape == (B, hidden)

    ref = jax.block_until_ready(_reference(word, pos1, pos2, params))
    # bf16 matmul inputs (f32 accumulation) -> loosened tolerance vs f32 ref.
    assert jnp.allclose(out, ref, atol=1e-2, rtol=1e-2), "mismatch vs reference"

    print("KERNEL_OK")
</pallas_src>

<mosaic_0001>
module attributes {stable_mosaic.version = 11 : i64} {
  func.func @_cnn_encoder_kernel(%arg0: i32, %arg1: memref<18x8x60xbf16, #tpu.memory_space<vmem>>, %arg2: memref<3x60x256xbf16, #tpu.memory_space<vmem>>, %arg3: memref<1x256xf32, #tpu.memory_space<vmem>>, %arg4: memref<8x256xf32, #tpu.memory_space<vmem>>) attributes {dimension_semantics = [#tpu.dimension_semantics<parallel>], iteration_bounds = array<i64: 1>, scalar_prefetch = 0 : i64, scratch_operands = 0 : i64, tpu.core_type = #tpu.core_type<tc>, window_params = [{transform_indices = @transform_0, window_bounds = array<i64: 18, 8, 60>}, {pipeline_mode = #tpu.pipeline_mode<synchronous>, transform_indices = @transform_1, window_bounds = array<i64: 3, 60, 256>}, {pipeline_mode = #tpu.pipeline_mode<synchronous>, transform_indices = @transform_2, window_bounds = array<i64: 1, 256>}, {transform_indices = @transform_3, window_bounds = array<i64: 8, 256>}]} {
    %c0 = arith.constant 0 : index
    %c0_0 = arith.constant 0 : index
    %c0_1 = arith.constant 0 : index
    %0 = vector.load %arg2[%c0, %c0_0, %c0_1] : memref<3x60x256xbf16, #tpu.memory_space<vmem>>, vector<1x60x256xbf16>
    %1 = vector.shape_cast %0 : vector<1x60x256xbf16> to vector<60x256xbf16>
    %c1 = arith.constant 1 : index
    %c0_2 = arith.constant 0 : index
    %c0_3 = arith.constant 0 : index
    %2 = vector.load %arg2[%c1, %c0_2, %c0_3] : memref<3x60x256xbf16, #tpu.memory_space<vmem>>, vector<1x60x256xbf16>
    %3 = vector.shape_cast %2 : vector<1x60x256xbf16> to vector<60x256xbf16>
    %c2 = arith.constant 2 : index
    %c0_4 = arith.constant 0 : index
    %c0_5 = arith.constant 0 : index
    %4 = vector.load %arg2[%c2, %c0_4, %c0_5] : memref<3x60x256xbf16, #tpu.memory_space<vmem>>, vector<1x60x256xbf16>
    %5 = vector.shape_cast %4 : vector<1x60x256xbf16> to vector<60x256xbf16>
    %c0_6 = arith.constant 0 : index
    %c0_7 = arith.constant 0 : index
    %c0_8 = arith.constant 0 : index
    %6 = vector.load %arg1[%c0_6, %c0_7, %c0_8] : memref<18x8x60xbf16, #tpu.memory_space<vmem>>, vector<1x8x60xbf16>
    %7 = vector.shape_cast %6 : vector<1x8x60xbf16> to vector<8x60xbf16>
    %cst = arith.constant dense<0.000000e+00> : vector<8x256xf32>
    %8 = tpu.matmul %7, %1, %cst {dimension_numbers = #tpu.dot_dimension_numbers<[1], [0], [0], [1], [0, 0, 1, 1], [], []>} : vector<8x60xbf16>, vector<60x256xbf16>, vector<8x256xf32> -> vector<8x256xf32>
    %c1_9 = arith.constant 1 : index
    %c0_10 = arith.constant 0 : index
    %c0_11 = arith.constant 0 : index
    %9 = vector.load %arg1[%c1_9, %c0_10, %c0_11] : memref<18x8x60xbf16, #tpu.memory_space<vmem>>, vector<1x8x60xbf16>
    %10 = vector.shape_cast %9 : vector<1x8x60xbf16> to vector<8x60xbf16>
    %cst_12 = arith.constant dense<0.000000e+00> : vector<8x256xf32>
    %11 = tpu.matmul %10, %3, %cst_12 {dimension_numbers = #tpu.dot_dimension_numbers<[1], [0], [0], [1], [0, 0, 1, 1], [], []>} : vector<8x60xbf16>, vector<60x256xbf16>, vector<8x256xf32> -> vector<8x256xf32>
    %12 = arith.addf %8, %11 : vector<8x256xf32>
    %c2_13 = arith.constant 2 : index
    %c0_14 = arith.constant 0 : index
    %c0_15 = arith.constant 0 : index
    %13 = vector.load %arg1[%c2_13, %c0_14, %c0_15] : memref<18x8x60xbf16, #tpu.memory_space<vmem>>, vector<1x8x60xbf16>
    %14 = vector.shape_cast %13 : vector<1x8x60xbf16> to vector<8x60xbf16>
    %cst_16 = arith.constant dense<0.000000e+00> : vector<8x256xf32>
    %15 = tpu.matmul %14, %5, %cst_16 {dimension_numbers = #tpu.dot_dimension_numbers<[1], [0], [0], [1], [0, 0, 1, 1], [], []>} : vector<8x60xbf16>, vector<60x256xbf16>, vector<8x256xf32> -> vector<8x256xf32>
    %16 = arith.addf %12, %15 : vector<8x256xf32>
    %c1_17 = arith.constant 1 : index
    %c0_18 = arith.constant 0 : index
    %c0_19 = arith.constant 0 : index
    %17 = vector.load %arg1[%c1_17, %c0_18, %c0_19] : memref<18x8x60xbf16, #tpu.memory_space<vmem>>, vector<1x8x60xbf16>
    %18 = vector.shape_cast %17 : vector<1x8x60xbf16> to vector<8x60xbf16>
    %cst_20 = arith.constant dense<0.000000e+00> : vector<8x256xf32>
    %19 = tpu.matmul %18, %1, %cst_20 {dimension_numbers = #tpu.dot_dimension_numbers<[1], [0], [0], [1], [0, 0, 1, 1], [], []>} : vector<8x60xbf16>, vector<60x256xbf16>, vector<8x256xf32> -> vector<8x256xf32>
    %c2_21 = arith.constant 2 : index
    %c0_22 = arith.constant 0 : index
    %c0_23 = arith.constant 0 : index
    %20 = vector.load %arg1[%c2_21, %c0_22, %c0_23] : memref<18x8x60xbf16, #tpu.memory_space<vmem>>, vector<1x8x60xbf16>
    %21 = vector.shape_cast %20 : vector<1x8x60xbf16> to vector<8x60xbf16>
    %cst_24 = arith.constant dense<0.000000e+00> : vector<8x256xf32>
    %22 = tpu.matmul %21, %3, %cst_24 {dimension_numbers = #tpu.dot_dimension_numbers<[1], [0], [0], [1], [0, 0, 1, 1], [], []>} : vector<8x60xbf16>, vector<60x256xbf16>, vector<8x256xf32> -> vector<8x256xf32>
    %23 = arith.addf %19, %22 : vector<8x256xf32>
    %c3 = arith.constant 3 : index
    %c0_25 = arith.constant 0 : index
    %c0_26 = arith.constant 0 : index
    %24 = vector.load %arg1[%c3, %c0_25, %c0_26] : memref<18x8x60xbf16, #tpu.memory_space<vmem>>, vector<1x8x60xbf16>
    %25 = vector.shape_cast %24 : vector<1x8x60xbf16> to vector<8x60xbf16>
    %cst_27 = arith.constant dense<0.000000e+00> : vector<8x256xf32>
    %26 = tpu.matmul %25, %5, %cst_27 {dimension_numbers = #tpu.dot_dimension_numbers<[1], [0], [0], [1], [0, 0, 1, 1], [], []>} : vector<8x60xbf16>, vector<60x256xbf16>, vector<8x256xf32> -> vector<8x256xf32>
    %27 = arith.addf %23, %26 : vector<8x256xf32>
    %c2_28 = arith.constant 2 : index
    %c0_29 = arith.constant 0 : index
    %c0_30 = arith.constant 0 : index
    %28 = vector.load %arg1[%c2_28, %c0_29, %c0_30] : memref<18x8x60xbf16, #tpu.memory_space<vmem>>, vector<1x8x60xbf16>
    %29 = vector.shape_cast %28 : vector<1x8x60xbf16> to vector<8x60xbf16>
    %cst_31 = arith.constant dense<0.000000e+00> : vector<8x256xf32>
    %30 = tpu.matmul %29, %1, %cst_31 {dimension_numbers = #tpu.dot_dimension_numbers<[1], [0], [0], [1], [0, 0, 1, 1], [], []>} : vector<8x60xbf16>, vector<60x256xbf16>, vector<8x256xf32> -> vector<8x256xf32>
    %c3_32 = arith.constant 3 : index
    %c0_33 = arith.constant 0 : index
    %c0_34 = arith.constant 0 : index
    %31 = vector.load %arg1[%c3_32, %c0_33, %c0_34] : memref<18x8x60xbf16, #tpu.memory_space<vmem>>, vector<1x8x60xbf16>
    %32 = vector.shape_cast %31 : vector<1x8x60xbf16> to vector<8x60xbf16>
    %cst_35 = arith.constant dense<0.000000e+00> : vector<8x256xf32>
    %33 = tpu.matmul %32, %3, %cst_35 {dimension_numbers = #tpu.dot_dimension_numbers<[1], [0], [0], [1], [0, 0, 1, 1], [], []>} : vector<8x60xbf16>, vector<60x256xbf16>, vector<8x256xf32> -> vector<8x256xf32>
    %34 = arith.addf %30, %33 : vector<8x256xf32>
    %c4 = arith.constant 4 : index
    %c0_36 = arith.constant 0 : index
    %c0_37 = arith.constant 0 : index
    %35 = vector.load %arg1[%c4, %c0_36, %c0_37] : memref<18x8x60xbf16, #tpu.memory_space<vmem>>, vector<1x8x60xbf16>
    %36 = vector.shape_cast %35 : vector<1x8x60xbf16> to vector<8x60xbf16>
    %cst_38 = arith.constant dense<0.000000e+00> : vector<8x256xf32>
    %37 = tpu.matmul %36, %5, %cst_38 {dimension_numbers = #tpu.dot_dimension_numbers<[1], [0], [0], [1], [0, 0, 1, 1], [], []>} : vector<8x60xbf16>, vector<60x256xbf16>, vector<8x256xf32> -> vector<8x256xf32>
    %38 = arith.addf %34, %37 : vector<8x256xf32>
    %c3_39 = arith.constant 3 : index
    %c0_40 = arith.constant 0 : index
    %c0_41 = arith.constant 0 : index
    %39 = vector.load %arg1[%c3_39, %c0_40, %c0_41] : memref<18x8x60xbf16, #tpu.memory_space<vmem>>, vector<1x8x60xbf16>
    %40 = vector.shape_cast %39 : vector<1x8x60xbf16> to vector<8x60xbf16>
    %cst_42 = arith.constant dense<0.000000e+00> : vector<8x256xf32>
    %41 = tpu.matmul %40, %1, %cst_42 {dimension_numbers = #tpu.dot_dimension_numbers<[1], [0], [0], [1], [0, 0, 1, 1], [], []>} : vector<8x60xbf16>, vector<60x256xbf16>, vector<8x256xf32> -> vector<8x256xf32>
    %c4_43 = arith.constant 4 : index
    %c0_44 = arith.constant 0 : index
    %c0_45 = arith.constant 0 : index
    %42 = vector.load %arg1[%c4_43, %c0_44, %c0_45] : memref<18x8x60xbf16, #tpu.memory_space<vmem>>, vector<1x8x60xbf16>
    %43 = vector.shape_cast %42 : vector<1x8x60xbf16> to vector<8x60xbf16>
    %cst_46 = arith.constant dense<0.000000e+00> : vector<8x256xf32>
    %44 = tpu.matmul %43, %3, %cst_46 {dimension_numbers = #tpu.dot_dimension_numbers<[1], [0], [0], [1], [0, 0, 1, 1], [], []>} : vector<8x60xbf16>, vector<60x256xbf16>, vector<8x256xf32> -> vector<8x256xf32>
    %45 = arith.addf %41, %44 : vector<8x256xf32>
    %c5 = arith.constant 5 : index
    %c0_47 = arith.constant 0 : index
    %c0_48 = arith.constant 0 : index
    %46 = vector.load %arg1[%c5, %c0_47, %c0_48] : memref<18x8x60xbf16, #tpu.memory_space<vmem>>, vector<1x8x60xbf16>
    %47 = vector.shape_cast %46 : vector<1x8x60xbf16> to vector<8x60xbf16>
    %cst_49 = arith.constant dense<0.000000e+00> : vector<8x256xf32>
    %48 = tpu.matmul %47, %5, %cst_49 {dimension_numbers = #tpu.dot_dimension_numbers<[1], [0], [0], [1], [0, 0, 1, 1], [], []>} : vector<8x60xbf16>, vector<60x256xbf16>, vector<8x256xf32> -> vector<8x256xf32>
    %49 = arith.addf %45, %48 : vector<8x256xf32>
    %50 = arith.maximumf %16, %27 : vector<8x256xf32>
    %51 = arith.maximumf %38, %49 : vector<8x256xf32>
    %52 = arith.maximumf %50, %51 : vector<8x256xf32>
    %c1_i32 = arith.constant 1 : i32
    %c3_i32 = arith.constant 3 : i32
    %53 = arith.addi %c1_i32, %c3_i32 : i32
    %c1_i32_50 = arith.constant 1 : i32
    %54 = scf.for %arg5 = %c1_i32 to %53 step %c1_i32_50 iter_args(%arg6 = %52) -> (vector<8x256xf32>)  : i32 {
      %c4_i32 = arith.constant 4 : i32
      %61 = arith.muli %arg5, %c4_i32 : i32
      %c0_i32 = arith.constant 0 : i32
      %62 = arith.addi %61, %c0_i32 : i32
      %63 = arith.index_cast %62 : i32 to index
      %c0_57 = arith.constant 0 : index
      %c0_58 = arith.constant 0 : index
      %64 = vector.load %arg1[%63, %c0_57, %c0_58] : memref<18x8x60xbf16, #tpu.memory_space<vmem>>, vector<1x8x60xbf16>
      %65 = vector.shape_cast %64 : vector<1x8x60xbf16> to vector<8x60xbf16>
      %cst_59 = arith.constant dense<0.000000e+00> : vector<8x256xf32>
      %66 = tpu.matmul %65, %1, %cst_59 {dimension_numbers = #tpu.dot_dimension_numbers<[1], [0], [0], [1], [0, 0, 1, 1], [], []>} : vector<8x60xbf16>, vector<60x256xbf16>, vector<8x256xf32> -> vector<8x256xf32>
      %c1_i32_60 = arith.constant 1 : i32
      %67 = arith.addi %62, %c1_i32_60 : i32
      %68 = arith.index_cast %67 : i32 to index
      %c0_61 = arith.constant 0 : index
      %c0_62 = arith.constant 0 : index
      %69 = vector.load %arg1[%68, %c0_61, %c0_62] : memref<18x8x60xbf16, #tpu.memory_space<vmem>>, vector<1x8x60xbf16>
      %70 = vector.shape_cast %69 : vector<1x8x60xbf16> to vector<8x60xbf16>
      %cst_63 = arith.constant dense<0.000000e+00> : vector<8x256xf32>
      %71 = tpu.matmul %70, %3, %cst_63 {dimension_numbers = #tpu.dot_dimension_numbers<[1], [0], [0], [1], [0, 0, 1, 1], [], []>} : vector<8x60xbf16>, vector<60x256xbf16>, vector<8x256xf32> -> vector<8x256xf32>
      %72 = arith.addf %66, %71 : vector<8x256xf32>
      %c2_i32 = arith.constant 2 : i32
      %73 = arith.addi %62, %c2_i32 : i32
      %74 = arith.index_cast %73 : i32 to index
      %c0_64 = arith.constant 0 : index
      %c0_65 = arith.constant 0 : index
      %75 = vector.load %arg1[%74, %c0_64, %c0_65] : memref<18x8x60xbf16, #tpu.memory_space<vmem>>, vector<1x8x60xbf16>
      %76 = vector.shape_cast %75 : vector<1x8x60xbf16> to vector<8x60xbf16>
      %cst_66 = arith.constant dense<0.000000e+00> : vector<8x256xf32>
      %77 = tpu.matmul %76, %5, %cst_66 {dimension_numbers = #tpu.dot_dimension_numbers<[1], [0], [0], [1], [0, 0, 1, 1], [], []>} : vector<8x60xbf16>, vector<60x256xbf16>, vector<8x256xf32> -> vector<8x256xf32>
      %78 = arith.addf %72, %77 : vector<8x256xf32>
      %c1_i32_67 = arith.constant 1 : i32
      %79 = arith.addi %61, %c1_i32_67 : i32
      %80 = arith.index_cast %79 : i32 to index
      %c0_68 = arith.constant 0 : index
      %c0_69 = arith.constant 0 : index
      %81 = vector.load %arg1[%80, %c0_68, %c0_69] : memref<18x8x60xbf16, #tpu.memory_space<vmem>>, vector<1x8x60xbf16>
      %82 = vector.shape_cast %81 : vector<1x8x60xbf16> to vector<8x60xbf16>
      %cst_70 = arith.constant dense<0.000000e+00> : vector<8x256xf32>
      %83 = tpu.matmul %82, %1, %cst_70 {dimension_numbers = #tpu.dot_dimension_numbers<[1], [0], [0], [1], [0, 0, 1, 1], [], []>} : vector<8x60xbf16>, vector<60x256xbf16>, vector<8x256xf32> -> vector<8x256xf32>
      %c1_i32_71 = arith.constant 1 : i32
      %84 = arith.addi %79, %c1_i32_71 : i32
      %85 = arith.index_cast %84 : i32 to index
      %c0_72 = arith.constant 0 : index
      %c0_73 = arith.constant 0 : index
      %86 = vector.load %arg1[%85, %c0_72, %c0_73] : memref<18x8x60xbf16, #tpu.memory_space<vmem>>, vector<1x8x60xbf16>
      %87 = vector.shape_cast %86 : vector<1x8x60xbf16> to vector<8x60xbf16>
      %cst_74 = arith.constant dense<0.000000e+00> : vector<8x256xf32>
      %88 = tpu.matmul %87, %3, %cst_74 {dimension_numbers = #tpu.dot_dimension_numbers<[1], [0], [0], [1], [0, 0, 1, 1], [], []>} : vector<8x60xbf16>, vector<60x256xbf16>, vector<8x256xf32> -> vector<8x256xf32>
      %89 = arith.addf %83, %88 : vector<8x256xf32>
      %c2_i32_75 = arith.constant 2 : i32
      %90 = arith.addi %79, %c2_i32_75 : i32
      %91 = arith.index_cast %90 : i32 to index
      %c0_76 = arith.constant 0 : index
      %c0_77 = arith.constant 0 : index
      %92 = vector.load %arg1[%91, %c0_76, %c0_77] : memref<18x8x60xbf16, #tpu.memory_space<vmem>>, vector<1x8x60xbf16>
      %93 = vector.shape_cast %92 : vector<1x8x60xbf16> to vector<8x60xbf16>
      %cst_78 = arith.constant dense<0.000000e+00> : vector<8x256xf32>
      %94 = tpu.matmul %93, %5, %cst_78 {dimension_numbers = #tpu.dot_dimension_numbers<[1], [0], [0], [1], [0, 0, 1, 1], [], []>} : vector<8x60xbf16>, vector<60x256xbf16>, vector<8x256xf32> -> vector<8x256xf32>
      %95 = arith.addf %89, %94 : vector<8x256xf32>
      %c2_i32_79 = arith.constant 2 : i32
      %96 = arith.addi %61, %c2_i32_79 : i32
      %97 = arith.index_cast %96 : i32 to index
      %c0_80 = arith.constant 0 : index
      %c0_81 = arith.constant 0 : index
      %98 = vector.load %arg1[%97, %c0_80, %c0_81] : memref<18x8x60xbf16, #tpu.memory_space<vmem>>, vector<1x8x60xbf16>
      %99 = vector.shape_cast %98 : vector<1x8x60xbf16> to vector<8x60xbf16>
      %cst_82 = arith.constant dense<0.000000e+00> : vector<8x256xf32>
      %100 = tpu.matmul %99, %1, %cst_82 {dimension_numbers = #tpu.dot_dimension_numbers<[1], [0], [0], [1], [0, 0, 1, 1], [], []>} : vector<8x60xbf16>, vector<60x256xbf16>, vector<8x256xf32> -> vector<8x256xf32>
      %c1_i32_83 = arith.constant 1 : i32
      %101 = arith.addi %96, %c1_i32_83 : i32
      %102 = arith.index_cast %101 : i32 to index
      %c0_84 = arith.constant 0 : index
      %c0_85 = arith.constant 0 : index
      %103 = vector.load %arg1[%102, %c0_84, %c0_85] : memref<18x8x60xbf16, #tpu.memory_space<vmem>>, vector<1x8x60xbf16>
      %104 = vector.shape_cast %103 : vector<1x8x60xbf16> to vector<8x60xbf16>
      %cst_86 = arith.constant dense<0.000000e+00> : vector<8x256xf32>
      %105 = tpu.matmul %104, %3, %cst_86 {dimension_numbers = #tpu.dot_dimension_numbers<[1], [0], [0], [1], [0, 0, 1, 1], [], []>} : vector<8x60xbf16>, vector<60x256xbf16>, vector<8x256xf32> -> vector<8x256xf32>
      %106 = arith.addf %100, %105 : vector<8x256xf32>
      %c2_i32_87 = arith.constant 2 : i32
      %107 = arith.addi %96, %c2_i32_87 : i32
      %108 = arith.index_cast %107 : i32 to index
      %c0_88 = arith.constant 0 : index
      %c0_89 = arith.constant 0 : index
      %109 = vector.load %arg1[%108, %c0_88, %c0_89] : memref<18x8x60xbf16, #tpu.memory_space<vmem>>, vector<1x8x60xbf16>
      %110 = vector.shape_cast %109 : vector<1x8x60xbf16> to vector<8x60xbf16>
      %cst_90 = arith.constant dense<0.000000e+00> : vector<8x256xf32>
      %111 = tpu.matmul %110, %5, %cst_90 {dimension_numbers = #tpu.dot_dimension_numbers<[1], [0], [0], [1], [0, 0, 1, 1], [], []>} : vector<8x60xbf16>, vector<60x256xbf16>, vector<8x256xf32> -> vector<8x256xf32>
      %112 = arith.addf %106, %111 : vector<8x256xf32>
      %c3_i32_91 = arith.constant 3 : i32
      %113 = arith.addi %61, %c3_i32_91 : i32
      %114 = arith.index_cast %113 : i32 to index
      %c0_92 = arith.constant 0 : index
      %c0_93 = arith.constant 0 : index
      %115 = vector.load %arg1[%114, %c0_92, %c0_93] : memref<18x8x60xbf16, #tpu.memory_space<vmem>>, vector<1x8x60xbf16>
      %116 = vector.shape_cast %115 : vector<1x8x60xbf16> to vector<8x60xbf16>
      %cst_94 = arith.constant dense<0.000000e+00> : vector<8x256xf32>
      %117 = tpu.matmul %116, %1, %cst_94 {dimension_numbers = #tpu.dot_dimension_numbers<[1], [0], [0], [1], [0, 0, 1, 1], [], []>} : vector<8x60xbf16>, vector<60x256xbf16>, vector<8x256xf32> -> vector<8x256xf32>
      %c1_i32_95 = arith.constant 1 : i32
      %118 = arith.addi %113, %c1_i32_95 : i32
      %119 = arith.index_cast %118 : i32 to index
      %c0_96 = arith.constant 0 : index
      %c0_97 = arith.constant 0 : index
      %120 = vector.load %arg1[%119, %c0_96, %c0_97] : memref<18x8x60xbf16, #tpu.memory_space<vmem>>, vector<1x8x60xbf16>
      %121 = vector.shape_cast %120 : vector<1x8x60xbf16> to vector<8x60xbf16>
      %cst_98 = arith.constant dense<0.000000e+00> : vector<8x256xf32>
      %122 = tpu.matmul %121, %3, %cst_98 {dimension_numbers = #tpu.dot_dimension_numbers<[1], [0], [0], [1], [0, 0, 1, 1], [], []>} : vector<8x60xbf16>, vector<60x256xbf16>, vector<8x256xf32> -> vector<8x256xf32>
      %123 = arith.addf %117, %122 : vector<8x256xf32>
      %c2_i32_99 = arith.constant 2 : i32
      %124 = arith.addi %113, %c2_i32_99 : i32
      %125 = arith.index_cast %124 : i32 to index
      %c0_100 = arith.constant 0 : index
      %c0_101 = arith.constant 0 : index
      %126 = vector.load %arg1[%125, %c0_100, %c0_101] : memref<18x8x60xbf16, #tpu.memory_space<vmem>>, vector<1x8x60xbf16>
      %127 = vector.shape_cast %126 : vector<1x8x60xbf16> to vector<8x60xbf16>
      %cst_102 = arith.constant dense<0.000000e+00> : vector<8x256xf32>
      %128 = tpu.matmul %127, %5, %cst_102 {dimension_numbers = #tpu.dot_dimension_numbers<[1], [0], [0], [1], [0, 0, 1, 1], [], []>} : vector<8x60xbf16>, vector<60x256xbf16>, vector<8x256xf32> -> vector<8x256xf32>
      %129 = arith.addf %123, %128 : vector<8x256xf32>
      %130 = arith.maximumf %78, %95 : vector<8x256xf32>
      %131 = arith.maximumf %112, %129 : vector<8x256xf32>
      %132 = arith.maximumf %130, %131 : vector<8x256xf32>
      %133 = arith.maximumf %arg6, %132 : vector<8x256xf32>
      scf.yield %133 : vector<8x256xf32>
    }
    %c3_i32_51 = arith.constant 3 : i32
    %c0_52 = arith.constant 0 : index
    %c0_53 = arith.constant 0 : index
    %55 = vector.load %arg3[%c0_52, %c0_53] : memref<1x256xf32, #tpu.memory_space<vmem>>, vector<1x256xf32>
    %56 = vector.broadcast %55 : vector<1x256xf32> to vector<8x256xf32>
    %57 = arith.addf %54, %56 : vector<8x256xf32>
    %cst_54 = arith.constant 0.000000e+00 : f32
    %58 = vector.broadcast %cst_54 : f32 to vector<8x256xf32>
    %59 = arith.maximumf %57, %58 : vector<8x256xf32>
    %c0_55 = arith.constant 0 : index
    %c0_56 = arith.constant 0 : index
    %60 = vector.load %arg4[%c0_55, %c0_56] : memref<8x256xf32, #tpu.memory_space<vmem>>, vector<8x256xf32>
    tpu.vector_store %arg4[%c0_55, %c0_56], %59 {strides = array<i32>} : memref<8x256xf32, #tpu.memory_space<vmem>>, vector<8x256xf32>,
    return
  }
  func.func @transform_0(%arg0: i32) -> (i32, i32, i32) {
    %c0_i32 = arith.constant 0 : i32
    %c0_i32_0 = arith.constant 0 : i32
    %c0_i32_1 = arith.constant 0 : i32
    return %c0_i32, %arg0, %c0_i32_0 : i32, i32, i32
  }
  func.func @transform_1(%arg0: i32) -> (i32, i32, i32) {
    %c0_i32 = arith.constant 0 : i32
    %c0_i32_0 = arith.constant 0 : i32
    %c0_i32_1 = arith.constant 0 : i32
    %c0_i32_2 = arith.constant 0 : i32
    return %c0_i32, %c0_i32_0, %c0_i32_1 : i32, i32, i32
  }
  func.func @transform_2(%arg0: i32) -> (i32, i32) {
    %c0_i32 = arith.constant 0 : i32
    %c0_i32_0 = arith.constant 0 : i32
    %c0_i32_1 = arith.constant 0 : i32
    return %c0_i32, %c0_i32_0 : i32, i32
  }
  func.func @transform_3(%arg0: i32) -> (i32, i32) {
    %c0_i32 = arith.constant 0 : i32
    %c0_i32_0 = arith.constant 0 : i32
    return %arg0, %c0_i32 : i32, i32
  }
}

</mosaic_0001>

<bundles_post_ra>
// kernel: forward.1
= control target key start
LH: loop header
LB: loop body
LE: loop exit
PB: predicated region body
PF: predicated region fallthrough
CT: control target
= control target key end

     0   :  { %vm86_vm0 = vcmask 1045504   ;;  %vm82_vm1 = vcmask 490496   ;;  %s1583_s11 = smov 1   ;;  %s1744_s1 = inlined_call_operand.vmem [shape: bf16[3,60,256], index: 1, kind: input, shape index: {}]   ;;  %s1745_s2 = inlined_call_operand.vmem [shape: f32[1,256], index: 2, kind: input, shape index: {}]   ;;  %s1746_s3 = inlined_call_operand.vmem [shape: f32[8,256], index: 3, kind: output, shape index: {}]   ;;  %s1747_s0 = inlined_call_operand.vmem [shape: bf16[18,8,60], index: 0, kind: input, shape index: {}]  }
   0x1   :  { %v1000_v0 = vld [vmem:[%s1744_s1 + $0x70] sm:$0xf]  ;;  %v1154_v1 = vld [vmem:[%s1744_s1 + $0x74] sm:$0x30]  ;;  %v1153_v2 = vld [vmem:[%s1744_s1 + $0x74] sm:$0xf] }
   0x2   :  { %v1001_v3 = vor.u32 %v1154_v1, %v1000_v0  ;;  %v1002_v4 = vld [vmem:[%s1744_s1 + $0x78] sm:$0x30]  ;;  %v1034_v5 = vld [vmem:[%s1744_s1 + $0x30] sm:$0xf]  ;;  %v1146_v6 = vld [vmem:[%s1744_s1 + $0x34] sm:$0x30] }
   0x3   :  { %v1005_v7 = vor.u32 %v1153_v2, %v1002_v4  ;;  %v1035_v8 = vor.u32 %v1146_v6, %v1034_v5  ;;  %v1145_v9 = vld [vmem:[%s1744_s1 + $0x34] sm:$0xf]  ;;  %v1036_v10 = vld [vmem:[%s1744_s1 + $0x38] sm:$0x30]  ;;  %v992_v11 = vld [vmem:[%s1744_s1 + $0x60] sm:$0xf] }
   0x4   :  { %v1265_v12 = vsel %vm86_vm0, %v1001_v3, 0  ;;  %v1039_v13 = vor.u32 %v1145_v9, %v1036_v10  ;;  %v1152_v14 = vld [vmem:[%s1744_s1 + $0x64] sm:$0xf0]  ;;  %v1151_v15 = vld [vmem:[%s1744_s1 + $0x64] sm:$0xf] }
   0x5   :  { %97 = vmatpush.bf16.msra.mxu0 %v1265_v12  ;;  %v1275_v16 = vsel %vm86_vm0, %v1005_v7, 0  ;;  %v1278_v17 = vsel %vm86_vm0, %v1035_v8, 0  ;;  %v1280_v18 = vor.u32 %v1152_v14, %v992_v11  ;;  %v994_v19 = vld [vmem:[%s1744_s1 + $0x68] sm:$0xf0]  ;;  %v1026_v20 = vld [vmem:[%s1744_s1 + $0x20] sm:$0xf] }
   0x6   :  { %110 = vmatpush.bf16.msra.mxu1 %v1275_v16  ;;  %170 = vmatpush.bf16.msra.mxu2 %v1278_v17  ;;  %v1291_v21 = vsel %vm86_vm0, %v1039_v13, 0  ;;  %v1293_v22 = vor.u32 %v1151_v15, %v994_v19  ;;  %v1144_v23 = vld [vmem:[%s1744_s1 + $0x24] sm:$0xf0]  ;;  %v1143_v24 = vld [vmem:[%s1744_s1 + $0x24] sm:$0xf] }
   0x7   :  { %183 = vmatpush.bf16.msra.mxu3 %v1291_v21  ;;  %v1302_v25 = vor.u32 %v1144_v23, %v1026_v20  ;;  %v1028_v26 = vld [vmem:[%s1744_s1 + $0x28] sm:$0xf0]  ;;  %v984_v27 = vld [vmem:[%s1744_s1 + $0x50] sm:$0xf]  ;;  %v1150_v28 = vld [vmem:[%s1744_s1 + $0x54] sm:$0xf0] }
   0x8   :  { %v1313_v29 = vor.u32 %v1143_v24, %v1028_v26  ;;  %v1149_v30 = vld [vmem:[%s1744_s1 + $0x54] sm:$0xf]  ;;  %v986_v31 = vld [vmem:[%s1744_s1 + $0x58] sm:$0xf0]  ;;  %v1018_v32 = vld [vmem:[%s1744_s1 + $0x10] sm:$0xf]  ;;  %v1325_v33 = vor.u32 %v1150_v28, %v984_v27 }
   0x9   :  { %98 = vmatpush.bf16.msra.mxu0 %v1280_v18  ;;  %v1142_v34 = vld [vmem:[%s1744_s1 + $0x14] sm:$0xf0]  ;;  %v1141_v35 = vld [vmem:[%s1744_s1 + $0x14] sm:$0xf]  ;;  %v1020_v36 = vld [vmem:[%s1744_s1 + $0x18] sm:$0xf0]  ;;  %v1338_v37 = vor.u32 %v1149_v30, %v986_v31 }
   0xa   :  { %111 = vmatpush.bf16.msra.mxu1 %v1293_v22  ;;  %171 = vmatpush.bf16.msra.mxu2 %v1302_v25  ;;  %v1340_v38 = vor.u32 %v1142_v34, %v1018_v32  ;;  %v976_v39 = vld [vmem:[%s1744_s1 + $0x40] sm:$0xf]  ;;  %v1148_v40 = vld [vmem:[%s1744_s1 + $0x44] sm:$0xf0]  ;;  %v1147_v41 = vld [vmem:[%s1744_s1 + $0x44] sm:$0xf]  ;;  %v1352_v42 = vor.u32 %v1141_v35, %v1020_v36 }
   0xb   :  { %184 = vmatpush.bf16.msra.mxu3 %v1313_v29  ;;  %v978_v43 = vld [vmem:[%s1744_s1 + $0x48] sm:$0xf0]  ;;  %v1010_v44 = vld [vmem:[%s1744_s1] sm:$0xf]  ;;  %v1140_v45 = vld [vmem:[%s1744_s1 + $0x4] sm:$0xf0]  ;;  %v1370_v48 = vor.u32 %v1148_v40, %v976_v39 }
   0xc   :  { %v1139_v46 = vld [vmem:[%s1744_s1 + $0x4] sm:$0xf]  ;;  %v1012_v47 = vld [vmem:[%s1744_s1 + $0x8] sm:$0xf0]  ;;  %v1069_v49 = vld [vmem:[%s1744_s1 + $0xb0] sm:$0xf]  ;;  %v1380_v51 = vor.u32 %v1147_v41, %v978_v43  ;;  %v1382_v52 = vor.u32 %v1140_v45, %v1010_v44 }
   0xd   :  { %99 = vmatpush.bf16.msra.mxu0 %v1325_v33  ;;  %v1162_v50 = vld [vmem:[%s1744_s1 + $0xb4] sm:$0x30]  ;;  %v1161_v53 = vld [vmem:[%s1744_s1 + $0xb4] sm:$0xf]  ;;  %v1071_v54 = vld [vmem:[%s1744_s1 + $0xb8] sm:$0x30]  ;;  %v1391_v55 = vor.u32 %v1139_v46, %v1012_v47 }
   0xe   :  { %112 = vmatpush.bf16.msra.mxu1 %v1338_v37  ;;  %172 = vmatpush.bf16.msra.mxu2 %v1340_v38  ;;  %v1070_v56 = vor.u32 %v1162_v50, %v1069_v49  ;;  %v1074_v57 = vor.u32 %v1161_v53, %v1071_v54  ;;  %v1397_v58 = vld [vmem:[%s1747_s0 + $0x4] sm:$0xf]  ;;  %v41_v59 = vld [vmem:[%s1747_s0] sm:$0xf]  ;;  %v1160_v62 = vld [vmem:[%s1744_s1 + $0xa4] sm:$0xf0] }
   0xf   :  { %185 = vmatpush.bf16.msra.mxu3 %v1352_v42  ;;  %v1061_v61 = vld [vmem:[%s1744_s1 + $0xa0] sm:$0xf]  ;;  %v1159_v0 = vld [vmem:[%s1744_s1 + $0xa4] sm:$0xf]  ;;  %v1063_v1 = vld [vmem:[%s1744_s1 + $0xa8] sm:$0xf0] }
  0x10   :  { %v1407_v60 = vsel %vm86_vm0, %v1070_v56, 0  ;;  %v1419_v63 = vsel %vm86_vm0, %v1074_v57, 0  ;;  %v1432_v2 = vor.u32 %v1160_v62, %v1061_v61  ;;  %v1436_v3 = vor.u32 %v1159_v0, %v1063_v1  ;;  %v1053_v4 = vld [vmem:[%s1744_s1 + $0x90] sm:$0xf]  ;;  %v1158_v5 = vld [vmem:[%s1744_s1 + $0x94] sm:$0xf0] }
  0x11   :  { %100 = vmatpush.bf16.msra.mxu0 %v1370_v48  ;;  %v1157_v6 = vld [vmem:[%s1744_s1 + $0x94] sm:$0xf]  ;;  %v1055_v7 = vld [vmem:[%s1744_s1 + $0x98] sm:$0xf0]  ;;  %v1452_v8 = vor.u32 %v1158_v5, %v1053_v4  ;;  %v1045_v10 = vld [vmem:[%s1744_s1 + $0x80] sm:$0xf] }
  0x12   :  { %113 = vmatpush.bf16.msra.mxu1 %v1380_v51  ;;  %173 = vmatpush.bf16.msra.mxu2 %v1382_v52  ;;  %v1456_v9 = vor.u32 %v1157_v6, %v1055_v7  ;;  %v1156_v11 = vld [vmem:[%s1744_s1 + $0x84] sm:$0xf0]  ;;  %v1155_v13 = vld [vmem:[%s1744_s1 + $0x84] sm:$0xf]  ;;  %v1047_v14 = vld [vmem:[%s1744_s1 + $0x88] sm:$0xf0] }
  0x13   :  { %186 = vmatpush.bf16.msra.mxu3 %v1391_v55  ;;  %v1472_v15 = vor.u32 %v1156_v11, %v1045_v10  ;;  %v1476_v19 = vor.u32 %v1155_v13, %v1047_v14  ;;  %v1042_v20 = vld [vmem:[%s1747_s0 + $0x8] sm:$0xf]  ;;  %v1081_v23 = vld [vmem:[%s1747_s0 + $0xc] sm:$0xf]  ;;  %v1088_v24 = vld [vmem:[%s1747_s0 + $0x10] sm:$0xf] }
  0x14   :  { %1006 = vmatmul.msk.bf16.vlgmr.msra.gmra.mxu0 %vm82_vm1, %v1397_v58  ;;  %v1095_v26 = vld [vmem:[%s1747_s0 + $0x14] sm:$0xf] }
  0x15   :  { %1007 = vmatmul.msk.bf16.vlgmr.msra.gmra.mxu1 %vm82_vm1, %v1397_v58  ;;  %1040 = vmatmul.msk.bf16.vlgmr.msra.gmra.mxu2 %vm82_vm1, %v41_v59 }
  0x16   :  { %273 = vmatpush.bf16.msrb.mxu2 %v1265_v12  ;;  %1041 = vmatmul.msk.bf16.vlgmr.msra.gmra.mxu3 %vm82_vm1, %v41_v59 }
  0x17   :  { %286 = vmatpush.bf16.msrb.mxu3 %v1275_v16  ;;  %245 = vmatpush.bf16.msrb.mxu0 %v1407_v60 }
  0x18   :  { %258 = vmatpush.bf16.msrb.mxu1 %v1419_v63 }
  0x1a   :  { %274 = vmatpush.bf16.msrb.mxu2 %v1280_v18 }
  0x1b   :  { %287 = vmatpush.bf16.msrb.mxu3 %v1293_v22  ;;  %246 = vmatpush.bf16.msrb.mxu0 %v1432_v2 }
  0x1c   :  { %259 = vmatpush.bf16.msrb.mxu1 %v1436_v3 }
  0x1e   :  { %275 = vmatpush.bf16.msrb.mxu2 %v1325_v33 }
  0x1f   :  { %288 = vmatpush.bf16.msrb.mxu3 %v1338_v37  ;;  %247 = vmatpush.bf16.msrb.mxu0 %v1452_v8 }
  0x20   :  { %260 = vmatpush.bf16.msrb.mxu1 %v1456_v9 }
  0x22   :  { %276 = vmatpush.bf16.msrb.mxu2 %v1370_v48 }
  0x23   :  { %289 = vmatpush.bf16.msrb.mxu3 %v1380_v51  ;;  %248 = vmatpush.bf16.msrb.mxu0 %v1472_v15 }
  0x24   :  { %261 = vmatpush.bf16.msrb.mxu1 %v1476_v19 }
  0x25   :  { %1077 = vmatmul.msk.bf16.vlgmr.msrb.gmra.mxu2 %vm82_vm1, %v1042_v20 }
  0x26   :  { %330 = vmatpush.bf16.msra.mxu2 %v1407_v60  ;;  %1075 = vmatmul.msk.bf16.vlgmr.msrb.gmra.mxu0 %vm82_vm1, %v1042_v20 }
  0x27   :  { %343 = vmatpush.bf16.msra.mxu3 %v1419_v63  ;;  %299 = vmatpush.bf16.msra.mxu0 %v1278_v17 }
  0x28   :  { %312 = vmatpush.bf16.msra.mxu1 %v1291_v21  ;;  %1078 = vmatmul.msk.bf16.vlgmr.msrb.gmra.mxu3 %vm82_vm1, %v1042_v20 }
  0x29   :  { %1076 = vmatmul.msk.bf16.vlgmr.msrb.gmra.mxu1 %vm82_vm1, %v1042_v20 }
  0x2a   :  { %331 = vmatpush.bf16.msra.mxu2 %v1432_v2 }
  0x2b   :  { %344 = vmatpush.bf16.msra.mxu3 %v1436_v3  ;;  %300 = vmatpush.bf16.msra.mxu0 %v1302_v25 }
  0x2c   :  { %313 = vmatpush.bf16.msra.mxu1 %v1313_v29 }
  0x2e   :  { %332 = vmatpush.bf16.msra.mxu2 %v1452_v8 }
  0x2f   :  { %345 = vmatpush.bf16.msra.mxu3 %v1456_v9  ;;  %301 = vmatpush.bf16.msra.mxu0 %v1340_v38 }
  0x30   :  { %314 = vmatpush.bf16.msra.mxu1 %v1352_v42 }
  0x32   :  { %333 = vmatpush.bf16.msra.mxu2 %v1472_v15 }
  0x33   :  { %346 = vmatpush.bf16.msra.mxu3 %v1476_v19  ;;  %302 = vmatpush.bf16.msra.mxu0 %v1382_v52 }
  0x34   :  { %315 = vmatpush.bf16.msra.mxu1 %v1391_v55 }
  0x35   :  { %1082 = vmatmul.msk.bf16.vlgmr.msra.gmra.mxu2 %vm82_vm1, %v1081_v23 }
  0x36   :  { %384 = vmatpush.bf16.msrb.mxu2 %v1278_v17  ;;  %1079 = vmatmul.msk.bf16.vlgmr.msra.gmra.mxu0 %vm82_vm1, %v1397_v58 }
  0x37   :  { %397 = vmatpush.bf16.msrb.mxu3 %v1291_v21  ;;  %358 = vmatpush.bf16.msrb.mxu0 %v1265_v12 }
  0x38   :  { %371 = vmatpush.bf16.msrb.mxu1 %v1275_v16  ;;  %1083 = vmatmul.msk.bf16.vlgmr.msra.gmra.mxu3 %vm82_vm1, %v1081_v23 }
  0x39   :  { %1080 = vmatmul.msk.bf16.vlgmr.msra.gmra.mxu1 %vm82_vm1, %v1397_v58 }
  0x3a   :  { %385 = vmatpush.bf16.msrb.mxu2 %v1302_v25 }
  0x3b   :  { %398 = vmatpush.bf16.msrb.mxu3 %v1313_v29  ;;  %359 = vmatpush.bf16.msrb.mxu0 %v1280_v18 }
  0x3c   :  { %372 = vmatpush.bf16.msrb.mxu1 %v1293_v22 }
  0x3e   :  { %386 = vmatpush.bf16.msrb.mxu2 %v1340_v38 }
  0x3f   :  { %399 = vmatpush.bf16.msrb.mxu3 %v1352_v42  ;;  %360 = vmatpush.bf16.msrb.mxu0 %v1325_v33 }
  0x40   :  { %373 = vmatpush.bf16.msrb.mxu1 %v1338_v37 }
  0x42   :  { %387 = vmatpush.bf16.msrb.mxu2 %v1382_v52 }
  0x43   :  { %400 = vmatpush.bf16.msrb.mxu3 %v1391_v55  ;;  %361 = vmatpush.bf16.msrb.mxu0 %v1370_v48 }
  0x44   :  { %374 = vmatpush.bf16.msrb.mxu1 %v1380_v51 }
  0x45   :  { %1086 = vmatmul.msk.bf16.vlgmr.msrb.gmra.mxu2 %vm82_vm1, %v1042_v20 }
  0x46   :  { %443 = vmatpush.bf16.msra.mxu2 %v1265_v12  ;;  %1084 = vmatmul.msk.bf16.vlgmr.msrb.gmra.mxu0 %vm82_vm1, %v1081_v23 }
  0x47   :  { %456 = vmatpush.bf16.msra.mxu3 %v1275_v16  ;;  %415 = vmatpush.bf16.msra.mxu0 %v1407_v60 }
  0x48   :  { %428 = vmatpush.bf16.msra.mxu1 %v1419_v63  ;;  %1087 = vmatmul.msk.bf16.vlgmr.msrb.gmra.mxu3 %vm82_vm1, %v1042_v20 }
  0x49   :  { %1085 = vmatmul.msk.bf16.vlgmr.msrb.gmra.mxu1 %vm82_vm1, %v1081_v23 }
  0x4a   :  { %444 = vmatpush.bf16.msra.mxu2 %v1280_v18 }
  0x4b   :  { %457 = vmatpush.bf16.msra.mxu3 %v1293_v22  ;;  %416 = vmatpush.bf16.msra.mxu0 %v1432_v2 }
  0x4c   :  { %429 = vmatpush.bf16.msra.mxu1 %v1436_v3 }
  0x4e   :  { %445 = vmatpush.bf16.msra.mxu2 %v1325_v33 }
  0x4f   :  { %458 = vmatpush.bf16.msra.mxu3 %v1338_v37  ;;  %417 = vmatpush.bf16.msra.mxu0 %v1452_v8 }
  0x50   :  { %430 = vmatpush.bf16.msra.mxu1 %v1456_v9 }
  0x52   :  { %446 = vmatpush.bf16.msra.mxu2 %v1370_v48 }
  0x53   :  { %459 = vmatpush.bf16.msra.mxu3 %v1380_v51  ;;  %418 = vmatpush.bf16.msra.mxu0 %v1472_v15 }
  0x54   :  { %431 = vmatpush.bf16.msra.mxu1 %v1476_v19 }
  0x55   :  { %1091 = vmatmul.msk.bf16.vlgmr.msra.gmra.mxu2 %vm82_vm1, %v1088_v24 }
  0x56   :  { %500 = vmatpush.bf16.msrb.mxu2 %v1407_v60  ;;  %1089 = vmatmul.msk.bf16.vlgmr.msra.gmra.mxu0 %vm82_vm1, %v1088_v24 }
  0x57   :  { %513 = vmatpush.bf16.msrb.mxu3 %v1419_v63  ;;  %469 = vmatpush.bf16.msrb.mxu0 %v1278_v17 }
  0x58   :  { %482 = vmatpush.bf16.msrb.mxu1 %v1291_v21  ;;  %1092 = vmatmul.msk.bf16.vlgmr.msra.gmra.mxu3 %vm82_vm1, %v1088_v24 }
  0x59   :  { %1090 = vmatmul.msk.bf16.vlgmr.msra.gmra.mxu1 %vm82_vm1, %v1088_v24 }
  0x5a   :  { %501 = vmatpush.bf16.msrb.mxu2 %v1432_v2 }
  0x5b   :  { %514 = vmatpush.bf16.msrb.mxu3 %v1436_v3  ;;  %470 = vmatpush.bf16.msrb.mxu0 %v1302_v25 }
  0x5c   :  { %483 = vmatpush.bf16.msrb.mxu1 %v1313_v29 }
  0x5e   :  { %502 = vmatpush.bf16.msrb.mxu2 %v1452_v8 }
  0x5f   :  { %515 = vmatpush.bf16.msrb.mxu3 %v1456_v9  ;;  %471 = vmatpush.bf16.msrb.mxu0 %v1340_v38 }
  0x60   :  { %484 = vmatpush.bf16.msrb.mxu1 %v1352_v42 }
  0x62   :  { %503 = vmatpush.bf16.msrb.mxu2 %v1472_v15 }
  0x63   :  { %516 = vmatpush.bf16.msrb.mxu3 %v1476_v19  ;;  %472 = vmatpush.bf16.msrb.mxu0 %v1382_v52 }
  0x64   :  { %485 = vmatpush.bf16.msrb.mxu1 %v1391_v55 }
  0x65   :  { %1096 = vmatmul.msk.bf16.vlgmr.msrb.gmra.mxu2 %vm82_vm1, %v1095_v26 }
  0x66   :  { %1093 = vmatmul.msk.bf16.vlgmr.msrb.gmra.mxu0 %vm82_vm1, %v1081_v23 }
  0x68   :  { %1097 = vmatmul.msk.bf16.vlgmr.msrb.gmra.mxu3 %vm82_vm1, %v1095_v26 }
  0x69   :  { %1094 = vmatmul.msk.bf16.vlgmr.msrb.gmra.mxu1 %vm82_vm1, %v1081_v23 }
  0x91   :  { %v102_v27 = vpop.f32.mrf.mxu0 }
  0x92   :  { %v115_v28 = vpop.f32.mrf.mxu1 }
  0x98   :  { %v175_v30 = vpop.f32.mrf.mxu2 }
  0x99   :  { %v176_v31 = vadd.f32 %v175_v30, %v102_v27  ;;  %v188_v32 = vpop.f32.mrf.mxu3  ;;  %v104_v34 = vpop.f32.mrf.mxu0 }
  0x9a   :  { %v189_v35 = vadd.f32 %v188_v32, %v115_v28  ;;  %v117_v36 = vpop.f32.mrf.mxu1 }
  0xa0   :  { %v177_v39 = vpop.f32.mrf.mxu2 }
  0xa1   :  { %v190_v40 = vpop.f32.mrf.mxu3 }
  0xa3   :  { %v250_v41 = vpop.f32.mrf.mxu0 }
  0xa4   :  { %v267_v43 = vadd.f32 %v250_v41, %v176_v31 }
  0xa6   :  { %v263_v44 = vpop.f32.mrf.mxu1 }
  0xa7   :  { %v268_v45 = vadd.f32 %v263_v44, %v189_v35 }
  0xa8   :  { %v278_v46 = vpop.f32.mrf.mxu2 }
  0xab   :  { %v291_v47 = vpop.f32.mrf.mxu3  ;;  %v252_v49 = vpop.f32.mrf.mxu0 }
  0xae   :  { %v265_v50 = vpop.f32.mrf.mxu1 }
  0xb0   :  { %v280_v53 = vpop.f32.mrf.mxu2 }
  0xb3   :  { %v293_v54 = vpop.f32.mrf.mxu3  ;;  %v304_v56 = vpop.f32.mrf.mxu0 }
  0xb4   :  { %v305_v58 = vadd.f32 %v304_v56, %v278_v46 }
  0xb6   :  { %v317_v57 = vpop.f32.mrf.mxu1 }
  0xb7   :  { %v318_v59 = vadd.f32 %v317_v57, %v291_v47 }
  0xb8   :  { %v335_v61 = vpop.f32.mrf.mxu2 }
  0xb9   :  { %v352_v62 = vadd.f32 %v335_v61, %v305_v58 }
  0xbb   :  { %v348_v0 = vpop.f32.mrf.mxu3  ;;  %v306_v4 = vpop.f32.mrf.mxu0  ;;  %v524_v5 = vmax.f32 %v267_v43, %v352_v62 }
  0xbc   :  { %v353_v1 = vadd.f32 %v348_v0, %v318_v59 }
  0xbe   :  { %v319_v6 = vpop.f32.mrf.mxu1  ;;  %v525_v7 = vmax.f32 %v268_v45, %v353_v1 }
  0xc0   :  { %v337_v10 = vpop.f32.mrf.mxu2 }
  0xc3   :  { %v350_v11 = vpop.f32.mrf.mxu3  ;;  %v363_v13 = vpop.f32.mrf.mxu0 }
  0xc6   :  { %v376_v14 = vpop.f32.mrf.mxu1 }
  0xc8   :  { %v389_v20 = vpop.f32.mrf.mxu2 }
  0xc9   :  { %v390_v44 = vadd.f32 %v389_v20, %v363_v13 }
  0xcb   :  { %v402_v23 = vpop.f32.mrf.mxu3  ;;  %v365_v24 = vpop.f32.mrf.mxu0 }
  0xcc   :  { %v403_v46 = vadd.f32 %v402_v23, %v376_v14 }
  0xce   :  { %v378_v26 = vpop.f32.mrf.mxu1 }
  0xd0   :  { %v391_v27 = vpop.f32.mrf.mxu2 }
  0xd3   :  { %v404_v28 = vpop.f32.mrf.mxu3  ;;  %v420_v30 = vpop.f32.mrf.mxu0 }
  0xd4   :  { %v437_v50 = vadd.f32 %v420_v30, %v390_v44 }
  0xd6   :  { %v433_v31 = vpop.f32.mrf.mxu1 }
  0xd7   :  { %v438_v56 = vadd.f32 %v433_v31, %v403_v46 }
  0xd8   :  { %v448_v32 = vpop.f32.mrf.mxu2 }
  0xdb   :  { %v461_v34 = vpop.f32.mrf.mxu3  ;;  %v422_v35 = vpop.f32.mrf.mxu0 }
  0xde   :  { %v435_v36 = vpop.f32.mrf.mxu1 }
  0xe0   :  { %v450_v39 = vpop.f32.mrf.mxu2 }
  0xe3   :  { %v463_v40 = vpop.f32.mrf.mxu3  ;;  %v474_v41 = vpop.f32.mrf.mxu0 }
  0xe4   :  { %v475_v45 = vadd.f32 %v474_v41, %v448_v32 }
  0xe6   :  { %v487_v43 = vpop.f32.mrf.mxu1 }
  0xe7   :  { %v488_v47 = vadd.f32 %v487_v43, %v461_v34 }
  0xe8   :  { %v505_v49 = vpop.f32.mrf.mxu2 }
  0xe9   :  { %v522_v53 = vadd.f32 %v505_v49, %v475_v45 }
  0xeb   :  { %v518_v54 = vpop.f32.mrf.mxu3  ;;  %v476_v58 = vpop.f32.mrf.mxu0  ;;  %v526_v59 = vmax.f32 %v437_v50, %v522_v53 }
  0xec   :  { %v523_v57 = vadd.f32 %v518_v54, %v488_v47 }
  0xed   :  { %v528_v0 = vmax.f32 %v524_v5, %v526_v59  }
  0xee   :  { %v489_v61 = vpop.f32.mrf.mxu1  ;;  %v527_v62 = vmax.f32 %v438_v56, %v523_v57 }
  0xf0   :  { %v529_v1 = vmax.f32 %v525_v7, %v527_v62   ;;  %v507_v4 = vpop.f32.mrf.mxu2 }
  0xf3   :  { %v520_v6 = vpop.f32.mrf.mxu3 }
  0xf4 LB: > { %553 = vmatpush.bf16.msra.mxu0 %v1265_v12  ;;  %566 = vmatpush.bf16.msra.mxu1 %v1275_v16  ;;  %s1163_s12 = sshll.u32 %s1215_s11, 4  ;;  %s535_s11 = sadd.s32 1, %s1215_s11   ;;  %s1215_s11 = sphi %s1583_s11, %s535_s11   ;;  %v1211_v0 = vphi %v528_v0, %v1749_v0   ;;  %v1207_v1 = vphi %v529_v1, %v1748_v1  }
  0xf5   : > { %582 = vmatpush.bf16.msra.mxu2 %v1278_v17  ;;  %595 = vmatpush.bf16.msra.mxu3 %v1291_v21  ;;  %s1610_s15 = scalar_lea.vmem %s1747_s0, %s1163_s12  ;;  %p532_p0 = scmp.ge.s32.totalorder %s535_s11, 4  }
  0xf6   : > { %v1102_v5 = vld [vmem:[%s1610_s15 + $0x4] sm:$0xf]  ;;  %v541_v7 = vld [vmem:[%s1610_s15] sm:$0xf]  ;;  %v1109_v10 = vld [vmem:[%s1610_s15 + $0x8] sm:$0xf] }
  0xf7   : > { %v1118_v11 = vld [vmem:[%s1610_s15 + $0xc] sm:$0xf]  ;;  %v1127_v13 = vld [vmem:[%s1610_s15 + $0x10] sm:$0xf]  ;;  %v1136_v14 = vld [vmem:[%s1610_s15 + $0x14] sm:$0xf] }
  0xf8   : > { %554 = vmatpush.bf16.msra.mxu0 %v1280_v18  ;;  %567 = vmatpush.bf16.msra.mxu1 %v1293_v22 }
  0xf9   : > { %583 = vmatpush.bf16.msra.mxu2 %v1302_v25  ;;  %596 = vmatpush.bf16.msra.mxu3 %v1313_v29 }
  0xfc   : > { %555 = vmatpush.bf16.msra.mxu0 %v1325_v33  ;;  %568 = vmatpush.bf16.msra.mxu1 %v1338_v37 }
  0xfd   : > { %584 = vmatpush.bf16.msra.mxu2 %v1340_v38  ;;  %597 = vmatpush.bf16.msra.mxu3 %v1352_v42 }
 0x100   : > { %556 = vmatpush.bf16.msra.mxu0 %v1370_v48  ;;  %569 = vmatpush.bf16.msra.mxu1 %v1380_v51 }
 0x101   : > { %585 = vmatpush.bf16.msra.mxu2 %v1382_v52  ;;  %598 = vmatpush.bf16.msra.mxu3 %v1391_v55 }
 0x103   : > { %1103 = vmatmul.msk.bf16.vlgmr.msra.gmra.mxu0 %vm82_vm1, %v1102_v5  ;;  %1104 = vmatmul.msk.bf16.vlgmr.msra.gmra.mxu1 %vm82_vm1, %v1102_v5 }
 0x104   : > { %1105 = vmatmul.msk.bf16.vlgmr.msra.gmra.mxu2 %vm82_vm1, %v541_v7  ;;  %1106 = vmatmul.msk.bf16.vlgmr.msra.gmra.mxu3 %vm82_vm1, %v541_v7 }
 0x105   : > { %643 = vmatpush.bf16.msrb.mxu2 %v1265_v12  ;;  %656 = vmatpush.bf16.msrb.mxu3 %v1275_v16 }
 0x106   : > { %615 = vmatpush.bf16.msrb.mxu0 %v1407_v60  ;;  %628 = vmatpush.bf16.msrb.mxu1 %v1419_v63 }
 0x109   : > { %644 = vmatpush.bf16.msrb.mxu2 %v1280_v18  ;;  %657 = vmatpush.bf16.msrb.mxu3 %v1293_v22 }
 0x10a   : > { %616 = vmatpush.bf16.msrb.mxu0 %v1432_v2  ;;  %629 = vmatpush.bf16.msrb.mxu1 %v1436_v3 }
 0x10d   : > { %645 = vmatpush.bf16.msrb.mxu2 %v1325_v33  ;;  %658 = vmatpush.bf16.msrb.mxu3 %v1338_v37 }
 0x10e   : > { %617 = vmatpush.bf16.msrb.mxu0 %v1452_v8  ;;  %630 = vmatpush.bf16.msrb.mxu1 %v1456_v9 }
 0x111   : > { %646 = vmatpush.bf16.msrb.mxu2 %v1370_v48  ;;  %659 = vmatpush.bf16.msrb.mxu3 %v1380_v51 }
 0x112   : > { %618 = vmatpush.bf16.msrb.mxu0 %v1472_v15  ;;  %631 = vmatpush.bf16.msrb.mxu1 %v1476_v19 }
 0x114   : > { %1112 = vmatmul.msk.bf16.vlgmr.msrb.gmra.mxu2 %vm82_vm1, %v1109_v10  ;;  %1113 = vmatmul.msk.bf16.vlgmr.msrb.gmra.mxu3 %vm82_vm1, %v1109_v10 }
 0x115   : > { %702 = vmatpush.bf16.msra.mxu2 %v1407_v60  ;;  %715 = vmatpush.bf16.msra.mxu3 %v1419_v63 }
 0x116   : > { %669 = vmatpush.bf16.msra.mxu0 %v1278_v17  ;;  %682 = vmatpush.bf16.msra.mxu1 %v1291_v21 }
 0x117   : > { %1110 = vmatmul.msk.bf16.vlgmr.msrb.gmra.mxu0 %vm82_vm1, %v1109_v10  ;;  %1111 = vmatmul.msk.bf16.vlgmr.msrb.gmra.mxu1 %vm82_vm1, %v1109_v10 }
 0x119   : > { %703 = vmatpush.bf16.msra.mxu2 %v1432_v2  ;;  %716 = vmatpush.bf16.msra.mxu3 %v1436_v3 }
 0x11a   : > { %670 = vmatpush.bf16.msra.mxu0 %v1302_v25  ;;  %683 = vmatpush.bf16.msra.mxu1 %v1313_v29 }
 0x11d   : > { %704 = vmatpush.bf16.msra.mxu2 %v1452_v8  ;;  %717 = vmatpush.bf16.msra.mxu3 %v1456_v9 }
 0x11e   : > { %671 = vmatpush.bf16.msra.mxu0 %v1340_v38  ;;  %684 = vmatpush.bf16.msra.mxu1 %v1352_v42 }
 0x121   : > { %705 = vmatpush.bf16.msra.mxu2 %v1472_v15  ;;  %718 = vmatpush.bf16.msra.mxu3 %v1476_v19 }
 0x122   : > { %672 = vmatpush.bf16.msra.mxu0 %v1382_v52  ;;  %685 = vmatpush.bf16.msra.mxu1 %v1391_v55 }
 0x124   : > { %1119 = vmatmul.msk.bf16.vlgmr.msra.gmra.mxu2 %vm82_vm1, %v1118_v11  ;;  %1120 = vmatmul.msk.bf16.vlgmr.msra.gmra.mxu3 %vm82_vm1, %v1118_v11 }
 0x125   : > { %756 = vmatpush.bf16.msrb.mxu2 %v1278_v17  ;;  %769 = vmatpush.bf16.msrb.mxu3 %v1291_v21 }
 0x126   : > { %730 = vmatpush.bf16.msrb.mxu0 %v1265_v12  ;;  %743 = vmatpush.bf16.msrb.mxu1 %v1275_v16 }
 0x127   : > { %1114 = vmatmul.msk.bf16.vlgmr.msra.gmra.mxu0 %vm82_vm1, %v1102_v5  ;;  %1115 = vmatmul.msk.bf16.vlgmr.msra.gmra.mxu1 %vm82_vm1, %v1102_v5 }
 0x129   : > { %757 = vmatpush.bf16.msrb.mxu2 %v1302_v25  ;;  %770 = vmatpush.bf16.msrb.mxu3 %v1313_v29 }
 0x12a   : > { %731 = vmatpush.bf16.msrb.mxu0 %v1280_v18  ;;  %744 = vmatpush.bf16.msrb.mxu1 %v1293_v22 }
 0x12d   : > { %758 = vmatpush.bf16.msrb.mxu2 %v1340_v38  ;;  %771 = vmatpush.bf16.msrb.mxu3 %v1352_v42 }
 0x12e   : > { %732 = vmatpush.bf16.msrb.mxu0 %v1325_v33  ;;  %745 = vmatpush.bf16.msrb.mxu1 %v1338_v37 }
 0x131   : > { %759 = vmatpush.bf16.msrb.mxu2 %v1382_v52  ;;  %772 = vmatpush.bf16.msrb.mxu3 %v1391_v55 }
 0x132   : > { %733 = vmatpush.bf16.msrb.mxu0 %v1370_v48  ;;  %746 = vmatpush.bf16.msrb.mxu1 %v1380_v51 }
 0x134   : > { %1123 = vmatmul.msk.bf16.vlgmr.msrb.gmra.mxu2 %vm82_vm1, %v1109_v10  ;;  %1124 = vmatmul.msk.bf16.vlgmr.msrb.gmra.mxu3 %vm82_vm1, %v1109_v10 }
 0x135   : > { %817 = vmatpush.bf16.msra.mxu2 %v1265_v12  ;;  %830 = vmatpush.bf16.msra.mxu3 %v1275_v16 }
 0x136   : > { %789 = vmatpush.bf16.msra.mxu0 %v1407_v60  ;;  %802 = vmatpush.bf16.msra.mxu1 %v1419_v63 }
 0x137   : > { %1121 = vmatmul.msk.bf16.vlgmr.msrb.gmra.mxu0 %vm82_vm1, %v1118_v11  ;;  %1122 = vmatmul.msk.bf16.vlgmr.msrb.gmra.mxu1 %vm82_vm1, %v1118_v11 }
 0x139   : > { %818 = vmatpush.bf16.msra.mxu2 %v1280_v18  ;;  %831 = vmatpush.bf16.msra.mxu3 %v1293_v22 }
 0x13a   : > { %790 = vmatpush.bf16.msra.mxu0 %v1432_v2  ;;  %803 = vmatpush.bf16.msra.mxu1 %v1436_v3 }
 0x13d   : > { %819 = vmatpush.bf16.msra.mxu2 %v1325_v33  ;;  %832 = vmatpush.bf16.msra.mxu3 %v1338_v37 }
 0x13e   : > { %791 = vmatpush.bf16.msra.mxu0 %v1452_v8  ;;  %804 = vmatpush.bf16.msra.mxu1 %v1456_v9 }
 0x141   : > { %820 = vmatpush.bf16.msra.mxu2 %v1370_v48  ;;  %833 = vmatpush.bf16.msra.mxu3 %v1380_v51 }
 0x142   : > { %792 = vmatpush.bf16.msra.mxu0 %v1472_v15  ;;  %805 = vmatpush.bf16.msra.mxu1 %v1476_v19 }
 0x144   : > { %1130 = vmatmul.msk.bf16.vlgmr.msra.gmra.mxu2 %vm82_vm1, %v1127_v13  ;;  %1131 = vmatmul.msk.bf16.vlgmr.msra.gmra.mxu3 %vm82_vm1, %v1127_v13 }
 0x145   : > { %876 = vmatpush.bf16.msrb.mxu2 %v1407_v60  ;;  %889 = vmatpush.bf16.msrb.mxu3 %v1419_v63 }
 0x146   : > { %843 = vmatpush.bf16.msrb.mxu0 %v1278_v17  ;;  %856 = vmatpush.bf16.msrb.mxu1 %v1291_v21 }
 0x147   : > { %1128 = vmatmul.msk.bf16.vlgmr.msra.gmra.mxu0 %vm82_vm1, %v1127_v13  ;;  %1129 = vmatmul.msk.bf16.vlgmr.msra.gmra.mxu1 %vm82_vm1, %v1127_v13 }
 0x149   : > { %877 = vmatpush.bf16.msrb.mxu2 %v1432_v2  ;;  %890 = vmatpush.bf16.msrb.mxu3 %v1436_v3 }
 0x14a   : > { %844 = vmatpush.bf16.msrb.mxu0 %v1302_v25  ;;  %857 = vmatpush.bf16.msrb.mxu1 %v1313_v29 }
 0x14d   : > { %878 = vmatpush.bf16.msrb.mxu2 %v1452_v8  ;;  %891 = vmatpush.bf16.msrb.mxu3 %v1456_v9 }
 0x14e   : > { %845 = vmatpush.bf16.msrb.mxu0 %v1340_v38  ;;  %858 = vmatpush.bf16.msrb.mxu1 %v1352_v42 }
 0x151   : > { %879 = vmatpush.bf16.msrb.mxu2 %v1472_v15  ;;  %892 = vmatpush.bf16.msrb.mxu3 %v1476_v19 }
 0x152   : > { %846 = vmatpush.bf16.msrb.mxu0 %v1382_v52  ;;  %859 = vmatpush.bf16.msrb.mxu1 %v1391_v55 }
 0x154   : > { %1137 = vmatmul.msk.bf16.vlgmr.msrb.gmra.mxu2 %vm82_vm1, %v1136_v14  ;;  %1138 = vmatmul.msk.bf16.vlgmr.msrb.gmra.mxu3 %vm82_vm1, %v1136_v14 }
 0x157   : > { %1132 = vmatmul.msk.bf16.vlgmr.msrb.gmra.mxu0 %vm82_vm1, %v1118_v11  ;;  %1133 = vmatmul.msk.bf16.vlgmr.msrb.gmra.mxu1 %vm82_vm1, %v1118_v11 }
 0x180   : > { %v558_v20 = vpop.f32.mrf.mxu0  ;;  %v571_v23 = vpop.f32.mrf.mxu1 }
 0x187   : > { %v587_v24 = vpop.f32.mrf.mxu2  ;;  %v600_v26 = vpop.f32.mrf.mxu3 }
 0x188   : > { %v588_v27 = vadd.f32 %v587_v24, %v558_v20  ;;  %v601_v28 = vadd.f32 %v600_v26, %v571_v23  ;;  %v560_v30 = vpop.f32.mrf.mxu0  ;;  %v573_v31 = vpop.f32.mrf.mxu1 }
 0x18f   : > { %v589_v32 = vpop.f32.mrf.mxu2  ;;  %v602_v34 = vpop.f32.mrf.mxu3 }
 0x194   : > { %v620_v35 = vpop.f32.mrf.mxu0  ;;  %v633_v36 = vpop.f32.mrf.mxu1 }
 0x195   : > { %v637_v39 = vadd.f32 %v620_v35, %v588_v27  ;;  %v638_v40 = vadd.f32 %v633_v36, %v601_v28 }
 0x197   : > { %v648_v41 = vpop.f32.mrf.mxu2  ;;  %v661_v43 = vpop.f32.mrf.mxu3 }
 0x19c   : > { %v622_v44 = vpop.f32.mrf.mxu0  ;;  %v635_v45 = vpop.f32.mrf.mxu1 }
 0x19f   : > { %v650_v46 = vpop.f32.mrf.mxu2  ;;  %v663_v47 = vpop.f32.mrf.mxu3 }
 0x1a4   : > { %v674_v49 = vpop.f32.mrf.mxu0  ;;  %v687_v50 = vpop.f32.mrf.mxu1 }
 0x1a5   : > { %v675_v32 = vadd.f32 %v674_v49, %v648_v41  ;;  %v688_v34 = vadd.f32 %v687_v50, %v661_v43 }
 0x1a7   : > { %v707_v53 = vpop.f32.mrf.mxu2  ;;  %v720_v54 = vpop.f32.mrf.mxu3 }
 0x1a8   : > { %v724_v35 = vadd.f32 %v707_v53, %v675_v32  ;;  %v725_v36 = vadd.f32 %v720_v54, %v688_v34 }
 0x1ac   : > { %v676_v56 = vpop.f32.mrf.mxu0  ;;  %v689_v57 = vpop.f32.mrf.mxu1 }
 0x1af   : > { %v709_v58 = vpop.f32.mrf.mxu2  ;;  %v722_v59 = vpop.f32.mrf.mxu3 }
 0x1b4   : > { %v735_v61 = vpop.f32.mrf.mxu0  ;;  %v748_v62 = vpop.f32.mrf.mxu1 }
 0x1b7   : > { %v761_v4 = vpop.f32.mrf.mxu2  ;;  %v774_v6 = vpop.f32.mrf.mxu3 }
 0x1b8   : > { %v762_v44 = vadd.f32 %v761_v4, %v735_v61  ;;  %v775_v45 = vadd.f32 %v774_v6, %v748_v62 }
 0x1bc   : > { %v737_v5 = vpop.f32.mrf.mxu0  ;;  %v750_v7 = vpop.f32.mrf.mxu1 }
 0x1bf   : > { %v763_v10 = vpop.f32.mrf.mxu2  ;;  %v776_v11 = vpop.f32.mrf.mxu3 }
 0x1c4   : > { %v794_v13 = vpop.f32.mrf.mxu0  ;;  %v807_v14 = vpop.f32.mrf.mxu1 }
 0x1c5   : > { %v811_v58 = vadd.f32 %v794_v13, %v762_v44  ;;  %v812_v59 = vadd.f32 %v807_v14, %v775_v45 }
 0x1c7   : > { %v822_v20 = vpop.f32.mrf.mxu2  ;;  %v835_v23 = vpop.f32.mrf.mxu3 }
 0x1cc   : > { %v796_v24 = vpop.f32.mrf.mxu0  ;;  %v809_v26 = vpop.f32.mrf.mxu1 }
 0x1cd   : > { %v900_v24 = vmax.f32 %v637_v39, %v724_v35  ;;  %v901_v26 = vmax.f32 %v638_v40, %v725_v36  ;;  %v908_v39 = vld [vmem:[%s1745_s2] sm:$0x3] (%p532_p0) }
 0x1ce   :  { %v910_v40 = vperm.slane (%p532_p0), %v908_v39, 0 }
 0x1cf   : > { %v824_v27 = vpop.f32.mrf.mxu2  ;;  %v837_v28 = vpop.f32.mrf.mxu3 }
 0x1d4   : > { %v848_v30 = vpop.f32.mrf.mxu0  ;;  %v861_v31 = vpop.f32.mrf.mxu1 }
 0x1d5   : > { %v849_v46 = vadd.f32 %v848_v30, %v822_v20  ;;  %v862_v47 = vadd.f32 %v861_v31, %v835_v23 }
 0x1d7   : > { %v881_v56 = vpop.f32.mrf.mxu2  ;;  %v894_v57 = vpop.f32.mrf.mxu3 }
 0x1d8   : > { %v898_v5 = vadd.f32 %v881_v56, %v849_v46  ;;  %v899_v7 = vadd.f32 %v894_v57, %v862_v47 }
 0x1da   : > { %v902_v27 = vmax.f32 %v811_v58, %v898_v5  ;;  %v903_v28 = vmax.f32 %v812_v59, %v899_v7 }
 0x1dc   : > { %v850_v10 = vpop.f32.mrf.mxu0  ;;  %v863_v11 = vpop.f32.mrf.mxu1  ;;  %v904_v41 = vmax.f32 %v900_v24, %v902_v27  ;;  %v905_v43 = vmax.f32 %v901_v26, %v903_v28  ;;  %534 = sbr.rel (!%p532_p0) target bundleno = 244 (0xf4), region = 52 }
 0x1de   : > { %v906_v49 = vmax.f32 %v1211_v0, %v904_v41   ;;  %v907_v50 = vmax.f32 %v1207_v1, %v905_v43  }
 0x1df   : > { %v883_v53 = vpop.f32.mrf.mxu2  ;;  %v896_v54 = vpop.f32.mrf.mxu3 }
 0x1e0   : > { %v1748_v1 = vmov %v907_v50  ;;  %v1749_v0 = vmov %v906_v49  ;;  %v914_v61 = vadd.f32 (%p532_p0), %v910_v40, %v906_v49 }
 0x1e1   :  { %v911_v0 = vperm.slane %v908_v39, 1 }
 0x1e2   :  { %v916_v4 = vmax.f32 %v914_v61, 0.0 }
 0x1e3   :  { %v915_v62 = vadd.f32 %v911_v0, %v907_v50 }
 0x1e4   :  { %918 = vst [vmem:[%s1746_s3] sm:$0xff] %v916_v4 }
 0x1e5   :  { %v917_v6 = vmax.f32 %v915_v62, 0.0 }
 0x1e7   :  { %919 = vst [vmem:[%s1746_s3 + $0x8] sm:$0xff] %v917_v6 }

</bundles_post_ra>
